<compile_context>
chip_gen: v7x
topology: tpu7x:2x2x1
jax: 0.10.0
libtpu: 0.0.40
codegen_flags: <defaults>
</compile_context>

<pallas_src>
import functools

import numpy as np
import jax
import jax.numpy as jnp
from jax import lax
from jax.experimental import pallas as pl
from jax.experimental.pallas import tpu as pltpu


def _vmem_limit_bytes():
    # v7x has 64 MiB VMEM per TC, v5e/v6e 128 MiB -> derive the scoped limit.
    try:
        cap = int(getattr(pltpu.get_tpu_info(), "vmem_capacity_bytes",
                          64 * 1024 * 1024))
    except Exception:
        cap = 64 * 1024 * 1024
    return min(cap * 3 // 4, 96 * 1024 * 1024)


_VMEM_LIMIT = _vmem_limit_bytes()


def _round_up(x, m):
    return (x + m - 1) // m * m


def _pick_div_tile(dim, maxv, unit=128):
    """Largest tile <= maxv that divides `dim` (dim <= maxv -> full dim)."""
    if dim <= maxv:
        return dim
    t = (maxv // unit) * unit
    while t > unit and dim % t:
        t -= unit
    assert dim % t == 0, (dim, maxv, unit)
    return t


# ----------------------- fused matmul kernel (1x1 / 4x4 convs) -----------------------

def _mm_kernel_factory(has_res, leaky):
    def kernel(*refs):
        if has_res:
            x_ref, w_ref, r_ref, o_ref, acc_ref = refs
        else:
            x_ref, w_ref, o_ref, acc_ref = refs
            r_ref = None

        k = pl.program_id(2)
        prod = jnp.dot(x_ref[...], w_ref[...], preferred_element_type=jnp.float32)

        @pl.when(k == 0)
        def _():
            acc_ref[...] = prod                 # no extra zero-init pass

        @pl.when(k > 0)
        def _():
            acc_ref[...] += prod

        @pl.when(k == pl.num_programs(2) - 1)
        def _():
            y = acc_ref[...]
            if leaky:
                y = jnp.where(y >= 0.0, y, 0.2 * y)          # LeakyReLU(0.2)
            if has_res:
                y = y + r_ref[...].astype(jnp.float32)
            o_ref[...] = y.astype(o_ref.dtype)

    return kernel


def pallas_matmul(x, w, residual=None, leaky=False):
    """y = maybe_leaky(x @ w) (+ residual).  bf16 MXU operands, f32 accumulation."""
    # LeakyReLU-then-residual ordering would differ from the reference; the
    # network never needs both at once, so forbid it outright.
    assert not (leaky and residual is not None)
    M, K = x.shape
    Kw, N = w.shape
    assert K == Kw, (K, Kw)

    tk = _pick_div_tile(K, 1024, 128)
    tn = _pick_div_tile(N, 2048 if M <= 512 else 512, 128)   # wide tn for small-M late layers
    if K * N <= 128 * 128:                                   # overhead-bound: grow tm
        tm_max = 4096
    elif K * N <= 256 * 512:
        tm_max = 2048
    else:
        tm_max = 1024
    tm = min(tm_max, _round_up(M, 16))                       # bf16 min sublane tile is 16
    Mp = _round_up(M, tm)
    # v7x megacore: keep >= 2 steps along a parallel axis when it is cheap.
    if Mp // tm == 1 and N // tn == 1:
        if tn >= 256:
            tn //= 2
        elif tm >= 64:
            tm //= 2

    xp = x.astype(jnp.bfloat16)
    if Mp != M:
        xp = jnp.pad(xp, ((0, Mp - M), (0, 0)))
    wp = w.astype(jnp.bfloat16)

    args = [xp, wp]
    in_specs = [pl.BlockSpec((tm, tk), lambda i, j, k: (i, k)),
                pl.BlockSpec((tk, tn), lambda i, j, k: (k, j))]
    if residual is not None:
        rp = residual.astype(jnp.bfloat16)
        if Mp != M:
            rp = jnp.pad(rp, ((0, Mp - M), (0, 0)))
        args.append(rp)
        in_specs.append(pl.BlockSpec((tm, tn), lambda i, j, k: (i, j)))

    out = pl.pallas_call(
        _mm_kernel_factory(residual is not None, leaky),
        out_shape=jax.ShapeDtypeStruct((Mp, N), jnp.bfloat16),
        grid_spec=pltpu.PrefetchScalarGridSpec(
            num_scalar_prefetch=0,
            grid=(Mp // tm, N // tn, K // tk),
            in_specs=in_specs,
            out_specs=pl.BlockSpec((tm, tn), lambda i, j, k: (i, j)),
            scratch_shapes=[pltpu.VMEM((tm, tn), jnp.float32)],
        ),
        compiler_params=pltpu.CompilerParams(
            dimension_semantics=("parallel", "parallel", "arbitrary"),
            vmem_limit_bytes=_VMEM_LIMIT),
    )(*args)
    if Mp != M:
        out = out[:M]
    return out


# ------------------- banded grouped 3x3 conv kernel (no im2col) -------------------

def _grouped3x3_kernel(x_ref, w_ref, o_ref, acc_ref, *, RH, Wo, slabs, taps,
                       depthwise):
    # x_ref : (P, Hq, Wq, tn)   phase-split, spatially padded activation band (bf16)
    # w_ref : (9, tn, tn) MXU band   or   (9, tn) depthwise diagonal (bf16)
    # o_ref : (RH*Wo, tn)       one block of RH output rows, spatially flattened
    # acc_ref: (RH*Wo, tn) f32  VMEM scratch accumulator
    tn = o_ref.shape[-1]
    r0 = pl.multiple_of(pl.program_id(2) * RH, RH)

    # Hoisted column-shifted slabs: one windowed load per distinct
    # (phase-plane, column-offset) pair -- 3 for stride 1, 6 for stride 2 --
    # instead of 9 per-tap slices (cuts the VMEM repack traffic ~3x).
    slab_vals = [x_ref[p, pl.ds(r0 + rmin, RH + extra), pl.ds(co, Wo), :]
                 for (p, co, rmin, extra) in slabs]

    if depthwise:
        w_all = w_ref[...].astype(jnp.float32)              # (9, tn)

    for t, (sid, dr) in enumerate(taps):
        xt = slab_vals[sid]
        if xt.shape[0] != RH or dr:
            xt = xt[dr:dr + RH]
        xt = xt.reshape(RH * Wo, tn)
        if depthwise:
            # Dg == 1: pure VPU broadcast-FMA, no MXU FLOP inflation.
            contrib = xt.astype(jnp.float32) * w_all[t:t + 1, :]
        else:
            contrib = jnp.dot(xt, w_ref[t], preferred_element_type=jnp.float32)
        if t == 0:
            acc_ref[...] = contrib
        else:
            acc_ref[...] += contrib

    y = acc_ref[...]
    o_ref[...] = jnp.where(y >= 0.0, y, 0.2 * y).astype(o_ref.dtype)   # LeakyReLU(0.2)


def grouped_conv3x3(x, w_band, stride):
    """Grouped 3x3 conv (padding=1, groups=cardinality) + LeakyReLU(0.2).

    Direct banded convolution at OUTPUT resolution.  For stride 2 the wrapper
    splits the padded activation into 4 even/odd (row, col) phase planes so all
    in-kernel tap reads stay unit-stride; no full-resolution intermediate is
    ever produced.  9 taps are accumulated into an f32 VMEM scratch; the
    grouped weight is never densified and no im2col buffer hits HBM.
    """
    B, H, W, D = x.shape
    depthwise = (w_band.ndim == 3)
    if depthwise:
        n_bands, _, tn = w_band.shape
    else:
        n_bands, _, tn, _ = w_band.shape
    assert n_bands * tn == D

    Ho, Wo = (H - 1) // stride + 1, (W - 1) // stride + 1
    xp = jnp.pad(x, ((0, 0), (1, 1), (1, 1), (0, 0)))        # spatial pad = 1
    if stride == 1:
        xq = xp[:, None]                                      # (B, 1, H+2, W+2, D)
    else:
        assert stride == 2 and H % 2 == 0 and W % 2 == 0
        xq = jnp.stack([xp[:, pi::2, pj::2, :]
                        for pi in (0, 1) for pj in (0, 1)], axis=1)
        # (B, 4, Ho+1, Wo+1, D): plane 2*pi+pj holds x_pad[pi::2, pj::2]
    P, Hq, Wq = xq.shape[1:4]

    # Static tap -> (phase plane, row offset, col offset) decomposition.
    taps_raw = []
    for di in range(3):
        for dj in range(3):
            if stride == 1:
                taps_raw.append((0, di, dj))
            else:
                taps_raw.append((2 * (di % 2) + (dj % 2), di // 2, dj // 2))
    groups = {}
    for (p, ro, co) in taps_raw:
        groups.setdefault((p, co), []).append(ro)
    slabs, slab_id = [], {}
    for (p, co), ros in groups.items():
        slab_id[(p, co)] = len(slabs)
        slabs.append((p, co, min(ros), max(ros) - min(ros)))
    taps = [(slab_id[(p, co)], ro - slabs[slab_id[(p, co)]][2])
            for (p, ro, co) in taps_raw]

    RH = min(Ho, max(1, 8192 // Wo))                          # ~8K output rows per step
    while Ho % RH:
        RH -= 1
    n_h = Ho // RH

    kernel = functools.partial(_grouped3x3_kernel, RH=RH, Wo=Wo,
                               slabs=tuple(slabs), taps=tuple(taps),
                               depthwise=depthwise)
    w_spec = (pl.BlockSpec((None, 9, tn), lambda b, j, h: (j, 0, 0)) if depthwise
              else pl.BlockSpec((None, 9, tn, tn), lambda b, j, h: (j, 0, 0, 0)))

    out = pl.pallas_call(
        kernel,
        out_shape=jax.ShapeDtypeStruct((B, Ho * Wo, D), jnp.bfloat16),
        grid_spec=pltpu.PrefetchScalarGridSpec(
            num_scalar_prefetch=0,
            grid=(B, n_bands, n_h),
            in_specs=[
                # phase-split padded activation, one channel band; resident
                # across the independent row-block axis
                pl.BlockSpec((None, P, Hq, Wq, tn), lambda b, j, h: (b, 0, 0, 0, j)),
                w_spec,
            ],
            out_specs=pl.BlockSpec((None, RH * Wo, tn), lambda b, j, h: (b, h, j)),
            scratch_shapes=[pltpu.VMEM((RH * Wo, tn), jnp.float32)],
        ),
        compiler_params=pltpu.CompilerParams(
            dimension_semantics=("parallel", "parallel", "parallel"),
            vmem_limit_bytes=_VMEM_LIMIT),
    )(xq, w_band)
    return out.reshape(B, Ho, Wo, D)


# ------------------------------ conv glue (XLA data movement) ------------------------------

def _extract_patches(x, kh, kw, stride, pad):
    """im2col, only used for the two 4x4 convs (K = 64 and the tiny final conv)."""
    B, H, W, C = x.shape
    xp = jnp.pad(x, ((0, 0), (pad, pad), (pad, pad), (0, 0)))
    Ho = (H + 2 * pad - kh) // stride + 1
    Wo = (W + 2 * pad - kw) // stride + 1
    cols = []
    for i in range(kh):
        for j in range(kw):
            cols.append(xp[:, i:i + stride * (Ho - 1) + 1:stride,
                           j:j + stride * (Wo - 1) + 1:stride, :])
    return jnp.concatenate(cols, axis=-1), Ho, Wo


# --------------------- deterministic, pre-transformed parameters ---------------------

def block_cfg(ndf=64):
    cfg = []
    cfg += [(ndf, ndf, 1)]                       # Tunnel(1, ndf, ndf)
    cfg += [(ndf, ndf * 2, 2)]                   # DResNeXtBottleneck(ndf, 2ndf, 2)
    cfg += [(ndf * 2, ndf * 2, 1)] * 2           # Tunnel(2)
    cfg += [(ndf * 2, ndf * 4, 2)]
    cfg += [(ndf * 4, ndf * 4, 1)] * 3           # Tunnel(3)
    cfg += [(ndf * 4, ndf * 8, 2)]
    cfg += [(ndf * 8, ndf * 8, 1)] * 4           # Tunnel(4)
    cfg += [(ndf * 8, ndf * 16, 2)]
    cfg += [(ndf * 16, ndf * 16, 1)] * 2         # Tunnel(2)
    cfg += [(ndf * 16, ndf * 32, 2)]
    return cfg


def _band_grouped_weight(wg, cardinality):
    """PyTorch grouped weight (D, D//card, 3, 3) ->
       * Dg == 1, D <= 128 : (1, 9, D)  diagonal (depthwise VPU path)
       * otherwise         : (n_bands, 9, tn, tn) exact block-diagonal bands."""
    wg = np.asarray(wg, np.float32)
    D, Dg, KH, KW = wg.shape
    if Dg == 1 and D <= 128:
        wd = wg[:, 0].reshape(D, KH * KW).T                   # (9, D)
        return jnp.asarray(wd[None], jnp.bfloat16)            # (1, 9, D)
    tn = min(128, D)
    assert D % tn == 0 and tn % Dg == 0          # 128-aligned group boundaries
    n_bands = D // tn
    wb = np.zeros((n_bands, KH * KW, tn, tn), np.float32)
    for co in range(D):
        g = co // Dg
        j, co_l = divmod(co, tn)
        ci_l = g * Dg - j * tn
        for kh in range(KH):
            for kw in range(KW):
                wb[j, kh * KW + kw, ci_l:ci_l + Dg, co_l] = wg[co, :, kh, kw]
    return jnp.asarray(wb, jnp.bfloat16)


def _he(key, shape, fan_in):
    return jax.random.normal(key, shape, jnp.float32) / np.sqrt(fan_in)


def make_params(cfg, ndf=64, cardinality=32, seed=0):
    key = jax.random.PRNGKey(seed)

    def nk():
        nonlocal key
        key, sub = jax.random.split(key)
        return sub

    params = {}
    # Conv2d(4, ndf, 4, 2, 1): (Cout, Cin, 4, 4) -> (KHKWCin, Cout) bf16
    w0 = _he(nk(), (ndf, 4, 4, 4), 4 * 4 * 4)
    params["w0"] = jnp.transpose(w0, (2, 3, 1, 0)).reshape(4 * 4 * 4, ndf).astype(jnp.bfloat16)

    blocks = []
    for (cin, cout, stride) in cfg:
        D = cout // 2
        Dg = D // cardinality
        blk = {}
        wr = _he(nk(), (D, cin, 1, 1), cin)
        blk["reduce"] = wr[:, :, 0, 0].T.astype(jnp.bfloat16)            # (cin, D)
        wg = _he(nk(), (D, Dg, 3, 3), Dg * 9)
        blk["conv_band"] = _band_grouped_weight(wg, cardinality)
        we = _he(nk(), (cout, D, 1, 1), D)
        blk["expand"] = we[:, :, 0, 0].T.astype(jnp.bfloat16)            # (D, cout)
        if cin != cout:
            ws = _he(nk(), (cout, cin, 1, 1), cin)
            blk["shortcut"] = ws[:, :, 0, 0].T.astype(jnp.bfloat16)      # (cin, cout)
        blocks.append(blk)
    params["blocks"] = blocks

    # Conv2d(32ndf, 1, 4, 1, 0): (1, 32ndf, 4, 4) -> (KHKWCin, 1) f32
    wf = _he(nk(), (1, ndf * 32, 4, 4), ndf * 32 * 16)
    params["wf"] = jnp.transpose(wf, (2, 3, 1, 0)).reshape(ndf * 32 * 16, 1)
    return params


# ---------------------------------- forward ----------------------------------

def def_netD_forward(cfg, params, x_nchw):
    x = jnp.transpose(x_nchw, (0, 2, 3, 1)).astype(jnp.bfloat16)     # NCHW -> NHWC bf16
    B = x.shape[0]

    # Conv2d(4, ndf, 4, 2, 1) + LeakyReLU(0.2): small im2col (K=64) + fused matmul.
    patches, Ho, Wo = _extract_patches(x, 4, 4, 2, 1)
    x = pallas_matmul(patches.reshape(B * Ho * Wo, -1), params["w0"],
                      leaky=True).reshape(B, Ho, Wo, -1)

    for (cin, cout, stride), blk in zip(cfg, params["blocks"]):
        B, H, W, _ = x.shape
        D = cout // 2
        Ho, Wo = (H - 1) // stride + 1, (W - 1) // stride + 1
        # 1x1 reduce + LeakyReLU (fused)
        b = pallas_matmul(x.reshape(B * H * W, cin), blk["reduce"],
                          leaky=True).reshape(B, H, W, D)
        # grouped 3x3 + LeakyReLU, computed at output resolution
        b = grouped_conv3x3(b, blk["conv_band"], stride)              # (B, Ho, Wo, D)
        # shortcut path
        if "shortcut" in blk:
            xs = x if stride == 1 else x[:, ::stride, ::stride, :]
            res = pallas_matmul(xs.reshape(B * Ho * Wo, cin), blk["shortcut"])
        else:
            res = x.reshape(B * Ho * Wo, cout)                        # identity
        # 1x1 expand + fused residual add (no activation on this path)
        x = pallas_matmul(b.reshape(B * Ho * Wo, D), blk["expand"],
                          residual=res).reshape(B, Ho, Wo, cout)

    # Conv2d(32ndf, 1, 4, 1, 0): M = B, N = 1 -> plain XLA dot (negligible work).
    patches, Ho, Wo = _extract_patches(x, 4, 4, 1, 0)
    y = jnp.dot(patches.reshape(B * Ho * Wo, -1).astype(jnp.float32), params["wf"])
    y = y.reshape(B, Ho, Wo, 1)
    return jnp.transpose(y, (0, 3, 1, 2))                             # NHWC -> NCHW


# ------------------------------ small self-checks ------------------------------

def _check_matmul():
    x = jax.random.normal(jax.random.PRNGKey(1), (256, 128), jnp.float32)
    w = jax.random.normal(jax.random.PRNGKey(2), (128, 64), jnp.float32) / np.sqrt(128)
    xb, wb = x.astype(jnp.bfloat16), w.astype(jnp.bfloat16)
    got = pallas_matmul(xb, wb, leaky=True).astype(jnp.float32)
    ref = xb.astype(jnp.float32) @ wb.astype(jnp.float32)
    ref = jnp.where(ref >= 0, ref, 0.2 * ref)
    assert float(jnp.max(jnp.abs(got - ref))) < 0.1


def _check_grouped():
    card = 32
    for (D, stride) in [(32, 1), (32, 2), (64, 1), (64, 2), (256, 2)]:
        Dg = D // card
        H = W = 16
        kx, kw = jax.random.split(jax.random.PRNGKey(D * 10 + stride))
        x = jax.random.normal(kx, (2, H, W, D), jnp.float32).astype(jnp.bfloat16)
        wg = jax.random.normal(kw, (D, Dg, 3, 3), jnp.float32) / np.sqrt(Dg * 9)
        got = grouped_conv3x3(x, _band_grouped_weight(wg, card), stride).astype(jnp.float32)
        wgb = wg.astype(jnp.bfloat16).astype(jnp.float32)
        ref = lax.conv_general_dilated(
            x.astype(jnp.float32), jnp.transpose(wgb, (2, 3, 1, 0)),
            window_strides=(stride, stride), padding=((1, 1), (1, 1)),
            dimension_numbers=("NHWC", "HWIO", "NHWC"), feature_group_count=card)
        ref = jnp.where(ref >= 0, ref, 0.2 * ref)
        err = float(jnp.max(jnp.abs(got - ref)))
        assert err < 0.1, (D, stride, err)


if __name__ == "__main__":
    _check_matmul()
    _check_grouped()

    ndf, cardinality = 64, 32          # smallest width compatible with 32 groups
    cfg = block_cfg(ndf)
    params = make_params(cfg, ndf=ndf, cardinality=cardinality, seed=0)

    # 256x256 is the minimum spatial size the final 4x4 VALID conv admits after
    # the six stride-2 stages -> output (B, 1, 1, 1).
    x = jax.random.normal(jax.random.PRNGKey(0), (2, 4, 256, 256), jnp.float32)

    fwd = jax.jit(functools.partial(def_netD_forward, cfg))
    out = jax.block_until_ready(fwd(params, x))
    assert out.shape == (2, 1, 1, 1), out.shape
    assert bool(jnp.all(jnp.isfinite(out)))
    print("KERNEL_OK")
</pallas_src>

<mosaic_0001>
module attributes {stable_mosaic.version = 11 : i64} {
  func.func @kernel(%arg0: i32, %arg1: i32, %arg2: i32, %arg3: memref<128x128xbf16, #tpu.memory_space<vmem>>, %arg4: memref<128x64xbf16, #tpu.memory_space<vmem>>, %arg5: memref<128x64xbf16, #tpu.memory_space<vmem>>, %arg6: memref<128x64xf32, #tpu.memory_space<vmem>>) attributes {dimension_semantics = [#tpu.dimension_semantics<parallel>, #tpu.dimension_semantics<parallel>, #tpu.dimension_semantics<arbitrary>], iteration_bounds = array<i64: 2, 1, 1>, scalar_prefetch = 0 : i64, scratch_operands = 1 : i64, tpu.core_type = #tpu.core_type<tc>, window_params = [{transform_indices = @transform_0, window_bounds = array<i64: 128, 128>}, {transform_indices = @transform_1, window_bounds = array<i64: 128, 64>}, {transform_indices = @transform_2, window_bounds = array<i64: 128, 64>}]} {
    %c0 = arith.constant 0 : index
    %c0_0 = arith.constant 0 : index
    %0 = vector.load %arg3[%c0, %c0_0] : memref<128x128xbf16, #tpu.memory_space<vmem>>, vector<128x128xbf16>
    %c0_1 = arith.constant 0 : index
    %c0_2 = arith.constant 0 : index
    %1 = vector.load %arg4[%c0_1, %c0_2] : memref<128x64xbf16, #tpu.memory_space<vmem>>, vector<128x64xbf16>
    %cst = arith.constant dense<0.000000e+00> : vector<128x64xf32>
    %2 = tpu.matmul %0, %1, %cst {dimension_numbers = #tpu.dot_dimension_numbers<[1], [0], [0], [1], [0, 0, 1, 1], [], []>} : vector<128x128xbf16>, vector<128x64xbf16>, vector<128x64xf32> -> vector<128x64xf32>
    %c0_i32 = arith.constant 0 : i32
    %3 = arith.cmpi eq, %arg2, %c0_i32 : i32
    %4 = arith.extui %3 : i1 to i32
    %c0_i32_3 = arith.constant 0 : i32
    %5 = arith.cmpi ne, %4, %c0_i32_3 : i32
    scf.if %5 {
      %c0_8 = arith.constant 0 : index
      %c0_9 = arith.constant 0 : index
      %12 = vector.load %arg6[%c0_8, %c0_9] : memref<128x64xf32, #tpu.memory_space<vmem>>, vector<128x64xf32>
      tpu.vector_store %arg6[%c0_8, %c0_9], %2 {strides = array<i32>} : memref<128x64xf32, #tpu.memory_space<vmem>>, vector<128x64xf32>,
    } else {
    }
    %c0_i32_4 = arith.constant 0 : i32
    %6 = arith.cmpi sgt, %arg2, %c0_i32_4 : i32
    %7 = arith.extui %6 : i1 to i32
    %c0_i32_5 = arith.constant 0 : i32
    %8 = arith.cmpi ne, %7, %c0_i32_5 : i32
    scf.if %8 {
      %c0_8 = arith.constant 0 : index
      %c0_9 = arith.constant 0 : index
      %12 = vector.load %arg6[%c0_8, %c0_9] : memref<128x64xf32, #tpu.memory_space<vmem>>, vector<128x64xf32>
      %13 = arith.addf %12, %2 : vector<128x64xf32>
      %c0_10 = arith.constant 0 : index
      %c0_11 = arith.constant 0 : index
      %14 = vector.load %arg6[%c0_10, %c0_11] : memref<128x64xf32, #tpu.memory_space<vmem>>, vector<128x64xf32>
      tpu.vector_store %arg6[%c0_10, %c0_11], %13 {strides = array<i32>} : memref<128x64xf32, #tpu.memory_space<vmem>>, vector<128x64xf32>,
    } else {
    }
    %c0_i32_6 = arith.constant 0 : i32
    %9 = arith.cmpi eq, %arg2, %c0_i32_6 : i32
    %10 = arith.extui %9 : i1 to i32
    %c0_i32_7 = arith.constant 0 : i32
    %11 = arith.cmpi ne, %10, %c0_i32_7 : i32
    scf.if %11 {
      %c0_8 = arith.constant 0 : index
      %c0_9 = arith.constant 0 : index
      %12 = vector.load %arg6[%c0_8, %c0_9] : memref<128x64xf32, #tpu.memory_space<vmem>>, vector<128x64xf32>
      %cst_10 = arith.constant 0.000000e+00 : f32
      %13 = vector.broadcast %cst_10 : f32 to vector<128x64xf32>
      %14 = arith.cmpf oge, %12, %13 : vector<128x64xf32>
      %cst_11 = arith.constant 2.000000e-01 : f32
      %15 = vector.broadcast %cst_11 : f32 to vector<128x64xf32>
      %16 = arith.mulf %15, %12 : vector<128x64xf32>
      %17 = arith.select %14, %12, %16 : vector<128x64xi1>, vector<128x64xf32>
      %18 = arith.truncf %17 : vector<128x64xf32> to vector<128x64xbf16>
      %c0_12 = arith.constant 0 : index
      %c0_13 = arith.constant 0 : index
      %19 = vector.load %arg5[%c0_12, %c0_13] : memref<128x64xbf16, #tpu.memory_space<vmem>>, vector<128x64xbf16>
      tpu.vector_store %arg5[%c0_12, %c0_13], %18 {strides = array<i32>} : memref<128x64xbf16, #tpu.memory_space<vmem>>, vector<128x64xbf16>,
    } else {
    }
    return
  }
  func.func @transform_0(%arg0: i32, %arg1: i32, %arg2: i32) -> (i32, i32) {
    %c0_i32 = arith.constant 0 : i32
    return %arg0, %arg2 : i32, i32
  }
  func.func @transform_1(%arg0: i32, %arg1: i32, %arg2: i32) -> (i32, i32) {
    %c0_i32 = arith.constant 0 : i32
    return %arg2, %arg1 : i32, i32
  }
  func.func @transform_2(%arg0: i32, %arg1: i32, %arg2: i32) -> (i32, i32) {
    %c0_i32 = arith.constant 0 : i32
    return %arg0, %arg1 : i32, i32
  }
}

</mosaic_0001>

<bundles_post_ra>
// kernel: tpu_custom_call.1
= control target key start
LH: loop header
LB: loop body
LE: loop exit
PB: predicated region body
PF: predicated region fallthrough
CT: control target
= control target key end

     0   :  { %7 = vsyncpa [#allocation4], 0  ;;  %s1302_s0 = inlined_call_operand.hbm [shape: bf16[256,128], index: 0, kind: input, shape index: {}]   ;;  %s1303_s1 = inlined_call_operand.vmem [shape: bf16[128,64], index: 1, kind: input, shape index: {}]   ;;  %s1304_s2 = inlined_call_operand.vmem [shape: bf16[256,64], index: 2, kind: output, shape index: {}]  }
   0x1   :  { %9 = vsyncpa [#allocation4 + $0x1], 0  ;;  %s1086_s9 = smov 0   ;;  %s1088_s10 = smov 0  }
   0x2   :  { %s1090_s11 = smov 0   ;;  %s1092_s12 = smov 0  }
   0x3   :  { %s1094_s13 = smov 0   ;;  %s1096_s14 = smov 0  }
   0x4 LB: > { %s786_s15 = sadd.s32 4294967295, %s1066_s14   ;;  %s34_s16 = sadd.s32 1, %s1062_s13  ;;  %s1066_s14 = sphi %s1096_s14, %s15_s14   ;;  %s1062_s13 = sphi %s1094_s13, %s1313_s13   ;;  %s1058_s12 = sphi %s1092_s12, %s1312_s12   ;;  %s1054_s11 = sphi %s1090_s11, %s1311_s11   ;;  %s1050_s10 = sphi %s1088_s10, %s1310_s10   ;;  %s1046_s9 = sphi %s1086_s9, %s1309_s9  }
   0x5   : > { %p36_p0 = scmp.ge.s32.totalorder %s34_s16, 2  ;;  %s43_s17 = sadd.s32 1, %s1054_s11 }
   0x6   : > { %p50_p1 = scmp.ne.s32.totalorder %s1054_s11, %s1050_s10  ;;  %p51_p2 = scmp.eq.s32.totalorder %s1066_s14, 0 }
   0x7   : > { %s1315_s16 = smov (%p36_p0, %s34_s16), 0  ;;  %p56_p4 = scmp.ne.s32.totalorder %s1050_s10, %s1046_s9 }
   0x8   : > { %p1122_p3 = por %p51_p2, %p50_p1  ;;  %s38_s19 = ssub.s32 %s1062_s13, %s1315_s16 }
   0x9   : > { %p57_p5 = scmp.eq.s32.totalorder %s786_s15, 0  ;;  %p41_p6 = scmp.eq.s32.totalorder %s38_s19, 0 }
   0xa   : > { %p919_p8 = scmp.lt.s32.totalorder %s1066_s14, 2  ;;  %s148_s22 = sand.u32 1, %s1054_s11  }
   0xb   : > { %p1129_p7 = por %p57_p5, %p56_p4  ;;  %s832_s23 = sshll.u32 %s1062_s13, 10 }
   0xc   : > { %s1135_s21 = scalar_select %p41_p6, %s1054_s11, %s43_s17  }
   0xd   : > { %s791_s24 = sshll.u32 %s148_s22, 6  ;;  %s1142_s27 = scalar_lea.hbm %s1302_s0, %s832_s23 }
   0xe   : > { %s152_s28 = scalar_lea.vmem [#allocation3], %s791_s24  ;;  %p1146_p9 = pnand %p919_p8, %p1122_p3 }
   0xf   : > { %s160_s29 = sshll.u32 %s152_s28, 4  ;;  %s1152_s3 = scalar_lea.sflag [#allocation4], %s148_s22  ;;  %s1150_s29 = int_to_ptr.vmem [resolvable:$true] %s160_s29 }
  0x10   : > { %s986_s4 = scalar_lea.hbm %s1142_s27, 1024  ;;  %p988_p11 = pneg %p1146_p9 }
  0x11   : > { %p987_p10 = scmp.ne.s32.totalorder %s1142_s27, %s986_s4  ;;  %s991_s7 = scalar_lea.hbm %s1302_s0, 2048 }
  0x12   : > { %p992_p0 = scmp.lt.u32.totalorder %s1142_s27, %s1302_s0  ;;  %p993_p1 = scmp.lt.u32.totalorder %s991_s7, %s986_s4 }
  0x13   : > { %p989_p12 = pnand %p988_p11, %p987_p10  ;;  %p995_p3 = scmp.lt.u32.totalorder %s986_s4, %s1142_s27 }
  0x14   : > { %p994_p2 = por %p993_p1, %p992_p0 }
  0x15   : > { %p990_p13 = pneg %p989_p12 }
  0x16   : > { %p996_p4 = por %p995_p3, %p994_p2 }
  0x18   : > { %p997_p5 = pnand %p996_p4, %p990_p13 }
  0x1a   : > { %1000 = shalt.err (!%p997_p5)
}
  0x1b   : > { %s1001_s15 = scalar_lea.vmem %s1150_s29, 1024  ;;  %s1068_s17 = smov [#allocation3]  }
  0x1c   : > { %p1002_p6 = scmp.ne.s32.totalorder %s1150_s29, %s1001_s15  ;;  %s1006_s18 = sshll.u32 %s1068_s17, 4  ;;  %s1007_s18 = int_to_ptr.vmem [resolvable:$false] %s1006_s18 }
  0x1d   : > { %s1008_s19 = scalar_lea.vmem %s1007_s18, 2048  ;;  %p1009_p12 = scmp.lt.s32.totalorder %s1150_s29, %s1007_s18 }
  0x1e   : > { %p1004_p8 = pnand %p1002_p6, %p988_p11  ;;  %p1010_p0 = scmp.lt.s32.totalorder %s1008_s19, %s1001_s15 }
  0x20   : > { %p1005_p10 = pneg %p1004_p8  ;;  %p1011_p1 = por %p1010_p0, %p1009_p12 }
  0x22   : > { %p1012_p2 = pnand %p1011_p1, %p1005_p10 }
  0x24   : > { %1015 = shalt.err (!%p1012_p2)
}
  0x25   : > { %s1069_s22 = smov 64   ;;  %s1070_s23 = smov 4  }
  0x26   : > { %918 = dma.hbm_to_vmem [thread:$0]  (!%p1146_p9), %s1142_s27, 1024, %s1150_s29, %s1152_s3, %s1069_s22, %s1069_s22, %s1070_s23  }
  0x27   : > { %p794_p11 = scmp.ge.s32.totalorder %s1066_s14, 1  ;;  %p168_p13 = scmp.lt.s32.totalorder %s1066_s14, 3 }
  0x29   : > { %p169_p3 = pnand %p794_p11, %p168_p13 }
  0x2a   : > { %s174_s24 = sand.u32 (!%p169_p3), 1, %s1050_s10  }
  0x2b   : > { %172 = sbr.rel (%p169_p3) target bundleno = 326 (0x146), region = 28  ;;  %s795_s25 = sshll.u32 (!%p169_p3), %s174_s24, 6 }
  0x2c   : > { %s175_s26 = scalar_lea.sflag (!%p169_p3), [#allocation4], %s174_s24  ;;  %s1183_s28 = scalar_lea.vmem (!%p169_p3), [#allocation3], %s795_s25 }
  0x32   : > { %1041 = dma.done.wait (%p1129_p7), %s175_s26, 1024  }
  0x33   : > { %1043 = vsyncadd (%p1129_p7), %s175_s26, 4294966272  ;;  %v970_v0 = vld [vmem:[%s1303_s1] sm:$0xff]   ;;  %v971_v1 = vld [vmem:[%s1303_s1 + $0x8] sm:$0xff]   ;;  %s796_s23 = sshll.u32 %s1058_s12, 4  ;;  %vm459_vm0 = vcmask 523264   ;;  %vm660_vm3 = vcmask 519168  }
  0x34   : > { %865 = vmatprep.subr.bf16.mxu0 %v970_v0  ;;  %897 = vmatprep.subr.bf16.mxu1 %v970_v0  ;;  %v972_v2 = vld [vmem:[%s1303_s1 + $0x10] sm:$0xff]   ;;  %v973_v3 = vld [vmem:[%s1303_s1 + $0x18] sm:$0xff]   ;;  %v978_v4 = vld [vmem:[%s1183_s28] sm:$0xff]   ;;  %p1222_p7 = scmp.lt.s32.totalorder %s796_s23, 31 }
  0x35   : > { %866 = vmatpush3.bf16.msra.mxu0 %v970_v0  ;;  %905 = vmatpush3.bf16.msra.mxu1 %v970_v0  ;;  %v979_v5 = vld [vmem:[%s1183_s28 + $0x20] sm:$0xff]   ;;  %v975_v7 = vld [vmem:[%s1303_s1 + $0x28] sm:$0xff]   ;;  %v976_v8 = vld [vmem:[%s1303_s1 + $0x30] sm:$0xff]  }
  0x36   : > { %867 = vmatprep.subr.bf16.mxu0 %v971_v1  ;;  %898 = vmatprep.subr.bf16.mxu1 %v971_v1  ;;  %v974_v6 = vld [vmem:[%s1303_s1 + $0x20] sm:$0xff]   ;;  %v977_v9 = vld [vmem:[%s1303_s1 + $0x38] sm:$0xff]   ;;  %v980_v10 = vld [vmem:[%s1183_s28 + $0x8] sm:$0xff]   ;;  %s1317_s23 = smov (!%p1222_p7, %s796_s23), 31 }
  0x37   : > { %881 = vmatprep.mubr.bf16.mxu0 %v978_v4  ;;  %889 = vmatprep.mubr.bf16.mxu1 %v979_v5  ;;  %v981_v11 = vld [vmem:[%s1183_s28 + $0x28] sm:$0xff]   ;;  %v982_v12 = vld [vmem:[%s1183_s28 + $0x10] sm:$0xff]   ;;  %v984_v14 = vld [vmem:[%s1183_s28 + $0x18] sm:$0xff]   ;;  %s797_s12 = sshll.u32 %s1317_s23, 2 }
  0x38   : > { %v983_v13 = vld [vmem:[%s1183_s28 + $0x30] sm:$0xff]   ;;  %v985_v15 = vld [vmem:[%s1183_s28 + $0x38] sm:$0xff]   ;;  %s1241_s28 = scalar_lea.vmem %s1304_s2, %s797_s12 }
  0x39   : > { %868 = vmatpush3.bf16.msra.mxu0 %v971_v1  ;;  %906 = vmatpush3.bf16.msra.mxu1 %v971_v1 }
  0x3a   : > { %869 = vmatprep.subr.bf16.mxu0 %v972_v2  ;;  %899 = vmatprep.subr.bf16.mxu1 %v972_v2 }
  0x3d   : > { %870 = vmatpush3.bf16.msra.mxu0 %v972_v2  ;;  %907 = vmatpush3.bf16.msra.mxu1 %v972_v2 }
  0x3e   : > { %871 = vmatprep.subr.bf16.mxu0 %v973_v3  ;;  %900 = vmatprep.subr.bf16.mxu1 %v973_v3 }
  0x41   : > { %872 = vmatpush3.bf16.msra.mxu0 %v973_v3  ;;  %908 = vmatpush3.bf16.msra.mxu1 %v973_v3 }
  0x42   : > { %873 = vmatprep.subr.bf16.mxu0 %v974_v6  ;;  %901 = vmatprep.subr.bf16.mxu1 %v974_v6 }
  0x45   : > { %874 = vmatpush3.bf16.msra.mxu0 %v974_v6  ;;  %909 = vmatpush3.bf16.msra.mxu1 %v974_v6 }
  0x46   : > { %875 = vmatprep.subr.bf16.mxu0 %v975_v7  ;;  %902 = vmatprep.subr.bf16.mxu1 %v975_v7 }
  0x49   : > { %876 = vmatpush3.bf16.msra.mxu0 %v975_v7  ;;  %910 = vmatpush3.bf16.msra.mxu1 %v975_v7 }
  0x4a   : > { %877 = vmatprep.subr.bf16.mxu0 %v976_v8  ;;  %903 = vmatprep.subr.bf16.mxu1 %v976_v8 }
  0x4d   : > { %878 = vmatpush3.bf16.msra.mxu0 %v976_v8  ;;  %911 = vmatpush3.bf16.msra.mxu1 %v976_v8 }
  0x4e   : > { %879 = vmatprep.subr.bf16.mxu0 %v977_v9  ;;  %904 = vmatprep.subr.bf16.mxu1 %v977_v9 }
  0x51   : > { %880 = vmatpush3.bf16.msra.mxu0 %v977_v9  ;;  %912 = vmatpush3.bf16.msra.mxu1 %v977_v9 }
  0x54   : > { %882 = vmatmul.mubr.bf16.vlgmr.msra.gmra.mrb[0].mxu0 %v980_v10  ;;  %890 = vmatmul.mubr.bf16.vlgmr.msra.gmra.mrb[0].mxu1 %v981_v11 }
  0x55   : > { %885 = vmatprep.mubr.bf16.mxu0 %v982_v12  ;;  %893 = vmatprep.mubr.bf16.mxu1 %v983_v13 }
  0x5c   : > { %886 = vmatmul.mubr.bf16.gmra.mrb[4].mxu0 %v984_v14  ;;  %894 = vmatmul.mubr.bf16.gmra.mrb[4].mxu1 %v985_v15 }
 0x127   : > { %v883_v16 = vpop.f32.mrb[0].mxu0  ;;  %v891_v17 = vpop.f32.mrb[0].mxu1 }
 0x128   : > { %462 = vst.msk [vmem:[#allocation2 + $0x10] sm:$0xff] %vm459_vm0, %v883_v16  ;;  %470 = vst.msk [vmem:[#allocation2 + $0x50] sm:$0xff] %vm459_vm0, %v891_v17  ;;  %v392_v18 = vpop.f32.mrb[1].mxu0  ;;  %v424_v19 = vpop.f32.mrb[1].mxu1 }
 0x129   : > { %460 = vst.msk [vmem:[#allocation2] sm:$0xff] %vm459_vm0, %v392_v18  ;;  %468 = vst.msk [vmem:[#allocation2 + $0x40] sm:$0xff] %vm459_vm0, %v424_v19  ;;  %v884_v20 = vpop.f32.mrb[2].mxu0  ;;  %v892_v21 = vpop.f32.mrb[2].mxu1 }
 0x12a   : > { %463 = vst.msk [vmem:[#allocation2 + $0x18] sm:$0xff] %vm459_vm0, %v884_v20  ;;  %471 = vst.msk [vmem:[#allocation2 + $0x58] sm:$0xff] %vm459_vm0, %v892_v21  ;;  %v395_v22 = vpop.f32.mrb[3].mxu0  ;;  %v427_v23 = vpop.f32.mrb[3].mxu1 }
 0x12b   : > { %461 = vst.msk [vmem:[#allocation2 + $0x8] sm:$0xff] %vm459_vm0, %v395_v22  ;;  %469 = vst.msk [vmem:[#allocation2 + $0x48] sm:$0xff] %vm459_vm0, %v427_v23 }
 0x12f   : > { %v534_v24 = vld [vmem:[#allocation2 + $0x10] sm:$0xff]  ;;  %v887_v26 = vpop.f32.mrb[4].mxu0  ;;  %v895_v27 = vpop.f32.mrb[4].mxu1 }
 0x130   : > { %v542_v25 = vld [vmem:[#allocation2 + $0x50] sm:$0xff]  ;;  %vm550_vm1 = vcmp.ge.f32.partialorder %v534_v24, 0.0  ;;  %v566_v28 = vmul.f32 0.2, %v534_v24  ;;  %466 = vst.msk [vmem:[#allocation2 + $0x30] sm:$0xff] %vm459_vm0, %v887_v26  ;;  %474 = vst.msk [vmem:[#allocation2 + $0x70] sm:$0xff] %vm459_vm0, %v895_v27 }
 0x131   : > { %vm558_vm2 = vcmp.ge.f32.partialorder %v542_v25, 0.0  ;;  %v574_v29 = vmul.f32 0.2, %v542_v25  ;;  %v532_v30 = vld [vmem:[#allocation2] sm:$0xff]  ;;  %v535_v32 = vld [vmem:[#allocation2 + $0x18] sm:$0xff]  ;;  %v408_v33 = vpop.f32.mrb[5].mxu0 }
 0x132   : > { %v540_v31 = vld [vmem:[#allocation2 + $0x40] sm:$0xff]  ;;  %v440_v34 = vpop.f32.mrb[5].mxu1  ;;  %v582_v35 = vsel %vm550_vm1, %v534_v24, %v566_v28  ;;  %vm548_vm4 = vcmp.ge.f32.partialorder %v532_v30, 0.0  ;;  %v564_v37 = vmul.f32 0.2, %v532_v30  ;;  %v543_v38 = vld [vmem:[#allocation2 + $0x58] sm:$0xff] }
 0x133   : > { %v590_v36 = vsel %vm558_vm2, %v542_v25, %v574_v29  ;;  %v533_v39 = vld [vmem:[#allocation2 + $0x8] sm:$0xff]  ;;  %464 = vst.msk [vmem:[#allocation2 + $0x20] sm:$0xff] %vm459_vm0, %v408_v33  ;;  %472 = vst.msk [vmem:[#allocation2 + $0x60] sm:$0xff] %vm459_vm0, %v440_v34  ;;  %v835_v40 = vpack.c.bf16 %v582_v35, %v582_v35  ;;  %vm556_vm5 = vcmp.ge.f32.partialorder %v540_v31, 0.0  ;;  %v572_v42 = vmul.f32 0.2, %v540_v31 }
 0x134   : > { %v843_v41 = vpack.c.bf16 %v590_v36, %v590_v36  ;;  %v541_v43 = vld [vmem:[#allocation2 + $0x48] sm:$0xff]  ;;  %v888_v44 = vpop.f32.mrb[6].mxu0  ;;  %v896_v45 = vpop.f32.mrb[6].mxu1  ;;  %v580_v46 = vsel %vm548_vm4, %v532_v30, %v564_v37  ;;  %vm551_vm6 = vcmp.ge.f32.partialorder %v535_v32, 0.0  ;;  %v567_v47 = vmul.f32 0.2, %v535_v32 }
 0x135   : > { %vm559_vm7 = vcmp.ge.f32.partialorder %v543_v38, 0.0  ;;  %467 = vst.msk [vmem:[#allocation2 + $0x38] sm:$0xff] %vm459_vm0, %v888_v44  ;;  %475 = vst.msk [vmem:[#allocation2 + $0x78] sm:$0xff] %vm459_vm0, %v896_v45  ;;  %v411_v48 = vpop.f32.mrb[7].mxu0  ;;  %v443_v49 = vpop.f32.mrb[7].mxu1  ;;  %v833_v50 = vpack.c.bf16 %v580_v46, %v580_v46  ;;  %v588_v51 = vsel %vm556_vm5, %v540_v31, %v572_v42  ;;  %vm549_vm8 = vcmp.ge.f32.partialorder %v533_v39, 0.0 }
 0x136   : > { %663 = vst.msk [vmem:[%s1241_s28 + $0x8] sm:$0xf] %vm660_vm3, %v835_v40  ;;  %671 = vst.msk [vmem:[%s1241_s28 + $0x28] sm:$0xf] %vm660_vm3, %v843_v41  ;;  %v575_v52 = vmul.f32 0.2, %v543_v38  ;;  %v841_v53 = vpack.c.bf16 %v588_v51, %v588_v51  ;;  %v583_v54 = vsel %vm551_vm6, %v535_v32, %v567_v47 }
 0x137   : > { %465 = vst.msk [vmem:[#allocation2 + $0x28] sm:$0xff] %vm459_vm0, %v411_v48  ;;  %473 = vst.msk [vmem:[#allocation2 + $0x68] sm:$0xff] %vm459_vm0, %v443_v49  ;;  %v565_v55 = vmul.f32 0.2, %v533_v39  ;;  %vm557_vm9 = vcmp.ge.f32.partialorder %v541_v43, 0.0  ;;  %v836_v56 = vpack.c.bf16 %v583_v54, %v583_v54  ;;  %v538_v59 = vld [vmem:[#allocation2 + $0x30] sm:$0xff] }
 0x138   : > { %661 = vst.msk [vmem:[%s1241_s28] sm:$0xf] %vm660_vm3, %v833_v50  ;;  %v591_v57 = vsel %vm559_vm7, %v543_v38, %v575_v52  ;;  %v573_v58 = vmul.f32 0.2, %v541_v43  ;;  %v546_v60 = vld [vmem:[#allocation2 + $0x70] sm:$0xff]  ;;  %vm554_vm10 = vcmp.ge.f32.partialorder %v538_v59, 0.0 }
 0x139   : > { %669 = vst.msk [vmem:[%s1241_s28 + $0x20] sm:$0xf] %vm660_vm3, %v841_v53  ;;  %v844_v61 = vpack.c.bf16 %v591_v57, %v591_v57  ;;  %v581_v62 = vsel %vm549_vm8, %v533_v39, %v565_v55  ;;  %v570_v63 = vmul.f32 0.2, %v538_v59  ;;  %664 = vst.msk [vmem:[%s1241_s28 + $0xc] sm:$0xf] %vm660_vm3, %v836_v56 }
 0x13a   : > { %v834_v0 = vpack.c.bf16 %v581_v62, %v581_v62  ;;  %v589_v1 = vsel %vm557_vm9, %v541_v43, %v573_v58  ;;  %vm562_vm11 = vcmp.ge.f32.partialorder %v546_v60, 0.0  ;;  %v578_v2 = vmul.f32 0.2, %v546_v60  ;;  %v536_v3 = vld [vmem:[#allocation2 + $0x20] sm:$0xff] }
 0x13b   : > { %v544_v4 = vld [vmem:[#allocation2 + $0x60] sm:$0xff]  ;;  %672 = vst.msk [vmem:[%s1241_s28 + $0x2c] sm:$0xf] %vm660_vm3, %v844_v61  ;;  %v842_v5 = vpack.c.bf16 %v589_v1, %v589_v1  ;;  %v586_v6 = vsel %vm554_vm10, %v538_v59, %v570_v63  ;;  %vm552_vm12 = vcmp.ge.f32.partialorder %v536_v3, 0.0  ;;  %v568_v7 = vmul.f32 0.2, %v536_v3 }
 0x13c   : > { %662 = vst.msk [vmem:[%s1241_s28 + $0x4] sm:$0xf] %vm660_vm3, %v834_v0  ;;  %v839_v8 = vpack.c.bf16 %v586_v6, %v586_v6  ;;  %v594_v9 = vsel %vm562_vm11, %v546_v60, %v578_v2  ;;  %vm560_vm13 = vcmp.ge.f32.partialorder %v544_v4, 0.0  ;;  %v576_v10 = vmul.f32 0.2, %v544_v4  ;;  %v539_v11 = vld [vmem:[#allocation2 + $0x38] sm:$0xff] }
 0x13d   : > { %v547_v12 = vld [vmem:[#allocation2 + $0x78] sm:$0xff]  ;;  %670 = vst.msk [vmem:[%s1241_s28 + $0x24] sm:$0xf] %vm660_vm3, %v842_v5  ;;  %v847_v13 = vpack.c.bf16 %v594_v9, %v594_v9  ;;  %v584_v14 = vsel %vm552_vm12, %v536_v3, %v568_v7  ;;  %vm555_vm14 = vcmp.ge.f32.partialorder %v539_v11, 0.0  ;;  %v571_v15 = vmul.f32 0.2, %v539_v11 }
 0x13e   : > { %v537_v16 = vld [vmem:[#allocation2 + $0x28] sm:$0xff]  ;;  %667 = vst.msk [vmem:[%s1241_s28 + $0x18] sm:$0xf] %vm660_vm3, %v839_v8  ;;  %v837_v18 = vpack.c.bf16 %v584_v14, %v584_v14  ;;  %v592_v19 = vsel %vm560_vm13, %v544_v4, %v576_v10  ;;  %vm563_vm15 = vcmp.ge.f32.partialorder %v547_v12, 0.0  ;;  %v579_v20 = vmul.f32 0.2, %v547_v12 }
 0x13f   : > { %v545_v17 = vld [vmem:[#allocation2 + $0x68] sm:$0xff]  ;;  %675 = vst.msk [vmem:[%s1241_s28 + $0x38] sm:$0xf] %vm660_vm3, %v847_v13  ;;  %v845_v21 = vpack.c.bf16 %v592_v19, %v592_v19  ;;  %v587_v22 = vsel %vm555_vm14, %v539_v11, %v571_v15  ;;  %vm553_vm0 = vcmp.ge.f32.partialorder %v537_v16, 0.0  ;;  %v569_v23 = vmul.f32 0.2, %v537_v16 }
 0x140   : > { %665 = vst.msk [vmem:[%s1241_s28 + $0x10] sm:$0xf] %vm660_vm3, %v837_v18  ;;  %v840_v24 = vpack.c.bf16 %v587_v22, %v587_v22  ;;  %v595_v25 = vsel %vm563_vm15, %v547_v12, %v579_v20  ;;  %vm561_vm1 = vcmp.ge.f32.partialorder %v545_v17, 0.0  ;;  %v577_v26 = vmul.f32 0.2, %v545_v17 }
 0x141   : > { %673 = vst.msk [vmem:[%s1241_s28 + $0x30] sm:$0xf] %vm660_vm3, %v845_v21  ;;  %v848_v27 = vpack.c.bf16 %v595_v25, %v595_v25  ;;  %v585_v28 = vsel %vm553_vm0, %v537_v16, %v569_v23 }
 0x142   : > { %668 = vst.msk [vmem:[%s1241_s28 + $0x1c] sm:$0xf] %vm660_vm3, %v840_v24  ;;  %v838_v29 = vpack.c.bf16 %v585_v28, %v585_v28  ;;  %v593_v30 = vsel %vm561_vm1, %v545_v17, %v577_v26 }
 0x143   : > { %676 = vst.msk [vmem:[%s1241_s28 + $0x3c] sm:$0xf] %vm660_vm3, %v848_v27  ;;  %v846_v31 = vpack.c.bf16 %v593_v30, %v593_v30 }
 0x144   : > { %666 = vst.msk [vmem:[%s1241_s28 + $0x14] sm:$0xf] %vm660_vm3, %v838_v29 }
 0x145   : > { %674 = vst.msk [vmem:[%s1241_s28 + $0x34] sm:$0xf] %vm660_vm3, %v846_v31 }
 0x146 PF: > { %s15_s14 = sadd.s32 1, %s1066_s14   ;;  %s1309_s9 = smov %s1050_s10 }
 0x147   : > { %p12_p9 = scmp.ge.s32.totalorder %s15_s14, 4   ;;  %s1310_s10 = smov %s1054_s11 }
 0x148   : > { %s1311_s11 = smov %s1135_s21  ;;  %s1312_s12 = smov %s1062_s13 }
 0x149   : > { %s1313_s13 = smov %s1315_s16  ;;  %14 = sbr.rel (!%p12_p9) target bundleno = 4 (0x4), region = 83 }
 0x150   :  { %705 = vsyncpa [#allocation4], 1 }
 0x151   :  { %707 = vsyncpa [#allocation4 + $0x1], 1 }

</bundles_post_ra>
